<compile_context>
chip_gen: v6e
topology: v6e:2x2x1
jax: 0.10.0
libtpu: 0.0.40
codegen_flags: <defaults>
</compile_context>

<pallas_src>
import functools

import jax
import jax.numpy as jnp
from jax.experimental import pallas as pl
from jax.experimental.pallas import tpu as pltpu


def _fused_quant_conv_relu_kernel(qp_ref, x_ref, w_ref, b_ref, o_ref, *,
                                  H, W, KH, KW, C, Cout):
    """One batch image per grid step.

    qp_ref : SMEM (3,)                 [scale, inv_scale, zero_point]
    x_ref  : VMEM (1, C, HWp)          zero-padded flattened activations
    w_ref  : VMEM (KH*KW, Cout, C)     per-tap weight matrices
    b_ref  : VMEM (Cout, 1)            bias column
    o_ref  : VMEM (1, Cout, H*W)       output (lane-dense last dim)
    """
    HW = H * W
    pad_amt = (KH // 2) * W + (KW // 2)

    scale = qp_ref[0]
    inv_scale = qp_ref[1]
    zp = qp_ref[2]

    # --- QuantStub: fused fake-quant (quint8 affine quantize -> dequantize). ---
    # Note fake_quant(0) == 0, so the flat zero-padding stays exactly zero.
    x = x_ref[0]                                              # (C, HWp) f32
    q = jnp.clip(jnp.round(x * inv_scale) + zp, 0.0, 255.0)
    xf = (q - zp) * scale

    # Column index of every flattened output position (masks row wrap-around).
    w_idx = jax.lax.broadcasted_iota(jnp.int32, (C, HW), 1) % W

    # --- Conv2d(kxk, padding=k//2) as KH*KW shifted dot-accumulates (implicit im2col).
    acc = jnp.zeros((Cout, HW), jnp.float32)
    for kh in range(KH):
        dh = kh - KH // 2
        for kw in range(KW):
            dw = kw - KW // 2
            start = dh * W + dw + pad_amt                     # static, >= 0
            tap = xf[:, start:start + HW]                     # (C, HW) lane slice
            if dw != 0:
                valid = (w_idx + dw >= 0) & (w_idx + dw < W)
                tap = jnp.where(valid, tap, 0.0)
            acc = acc + jnp.dot(w_ref[kh * KW + kw], tap,     # (Cout,C) x (C,HW)
                                preferred_element_type=jnp.float32)

    # --- bias + ReLU; DeQuantStub on a float output is the identity. ---
    o_ref[0] = jnp.maximum(acc + b_ref[...], 0.0).astype(o_ref.dtype)


def model_wrapper_forward(x, conv_w, conv_b):
    """x: (N, C, H, W) float32 NCHW. Returns (N, Cout, H, W) float32 NCHW."""
    N, C, H, W = x.shape
    Cout, Cin, KH, KW = conv_w.shape
    assert Cin == C and KH % 2 == 1 and KW % 2 == 1
    HW = H * W
    pad_amt = (KH // 2) * W + (KW // 2)
    HWp = HW + 2 * pad_amt

    # QuantStub observer: per-tensor affine quint8 qparams (MinMaxObserver-like).
    # TODO(synk): the min/max observer is one extra XLA reduction pass over x; true
    # int8 conv arithmetic (converted quantized model) is not modeled — we simulate
    # the quant/dequant stubs with fake-quant around a float conv.
    x_min = jnp.minimum(jnp.min(x), 0.0)
    x_max = jnp.maximum(jnp.max(x), 0.0)
    scale = jnp.maximum((x_max - x_min) / 255.0, 1e-8)
    zp = jnp.clip(jnp.round(-x_min / scale), 0.0, 255.0)
    inv_scale = 1.0 / scale
    qparams = jnp.stack([scale, inv_scale, zp]).astype(jnp.float32)

    # Layout prep (no activation transposes, no im2col materialization):
    # flatten spatial dims (free reshape for NCHW) and zero-pad the flat axis so every
    # conv tap becomes a contiguous lane slice inside the kernel.
    x_flat = x.reshape(N, C, HW)
    x_pad = jnp.pad(x_flat, ((0, 0), (0, 0), (pad_amt, pad_amt)))   # (N, C, HWp)

    # Tiny weight/bias reshapes (288 + 8 elements).
    w_taps = conv_w.transpose(2, 3, 0, 1).reshape(KH * KW, Cout, C).astype(jnp.float32)
    b_col = conv_b.reshape(Cout, 1).astype(jnp.float32)

    kernel = functools.partial(_fused_quant_conv_relu_kernel,
                               H=H, W=W, KH=KH, KW=KW, C=C, Cout=Cout)

    out = pl.pallas_call(
        kernel,
        out_shape=jax.ShapeDtypeStruct((N, Cout, HW), jnp.float32),
        grid=(N,),
        in_specs=[
            pl.BlockSpec(memory_space=pltpu.MemorySpace.SMEM),        # qparams
            pl.BlockSpec((1, C, HWp), lambda b: (b, 0, 0)),           # activations
            pl.BlockSpec((KH * KW, Cout, C), lambda b: (0, 0, 0)),    # weights (resident)
            pl.BlockSpec((Cout, 1), lambda b: (0, 0)),                # bias (resident)
        ],
        out_specs=pl.BlockSpec((1, Cout, HW), lambda b: (b, 0, 0)),
        compiler_params=pltpu.CompilerParams(
            dimension_semantics=("parallel",)),
    )(qparams, x_pad, w_taps, b_col)

    # DeQuantStub is identity; reshaping (N, Cout, H*W) -> NCHW is a free reshape.
    return out.reshape(N, Cout, H, W)


if __name__ == "__main__":
    key = jax.random.PRNGKey(0)
    kx, kw, kb = jax.random.split(key, 3)

    N, C, H, W = 2, 4, 16, 16
    Cout, KH, KW = 8, 3, 3

    x = jax.random.normal(kx, (N, C, H, W), dtype=jnp.float32)
    conv_w = 0.1 * jax.random.normal(kw, (Cout, C, KH, KW), dtype=jnp.float32)
    conv_b = 0.1 * jax.random.normal(kb, (Cout,), dtype=jnp.float32)

    out = jax.jit(model_wrapper_forward)(x, conv_w, conv_b)
    out = jax.block_until_ready(out)

    # Pure-JAX reference (same fake-quant formulation + conv + bias + ReLU).
    x_min = jnp.minimum(jnp.min(x), 0.0)
    x_max = jnp.maximum(jnp.max(x), 0.0)
    scale = jnp.maximum((x_max - x_min) / 255.0, 1e-8)
    zp = jnp.clip(jnp.round(-x_min / scale), 0.0, 255.0)
    inv_scale = 1.0 / scale
    x_fq_ref = (jnp.clip(jnp.round(x * inv_scale) + zp, 0.0, 255.0) - zp) * scale
    ref = jax.lax.conv_general_dilated(
        x_fq_ref, conv_w, window_strides=(1, 1), padding="SAME",
        dimension_numbers=("NCHW", "OIHW", "NCHW"))
    ref = jnp.maximum(ref + conv_b[None, :, None, None], 0.0)

    assert out.shape == (N, Cout, H, W)
    assert jnp.allclose(out, ref, rtol=1e-4, atol=1e-4), "mismatch vs JAX reference"
    print("KERNEL_OK")
</pallas_src>

<mosaic_0001>
module attributes {stable_mosaic.version = 11 : i64} {
  func.func @_fused_quant_conv_relu_kernel(%arg0: i32, %arg1: memref<3xf32, #tpu.memory_space<smem>>, %arg2: memref<1x4x290xf32, #tpu.memory_space<vmem>>, %arg3: memref<9x8x4xf32, #tpu.memory_space<vmem>>, %arg4: memref<8x1xf32, #tpu.memory_space<vmem>>, %arg5: memref<1x8x256xf32, #tpu.memory_space<vmem>>) attributes {dimension_semantics = [#tpu.dimension_semantics<parallel>], iteration_bounds = array<i64: 2>, scalar_prefetch = 0 : i64, scratch_operands = 0 : i64, tpu.core_type = #tpu.core_type<tc>, window_params = [{transform_indices = @transform_0, window_bounds = array<i64: 3>}, {transform_indices = @transform_1, window_bounds = array<i64: 1, 4, 290>}, {pipeline_mode = #tpu.pipeline_mode<synchronous>, transform_indices = @transform_2, window_bounds = array<i64: 9, 8, 4>}, {pipeline_mode = #tpu.pipeline_mode<synchronous>, transform_indices = @transform_3, window_bounds = array<i64: 8, 1>}, {transform_indices = @transform_4, window_bounds = array<i64: 1, 8, 256>}]} {
    %c0 = arith.constant 0 : index
    %0 = memref.load %arg1[%c0] : memref<3xf32, #tpu.memory_space<smem>>
    %c1 = arith.constant 1 : index
    %1 = memref.load %arg1[%c1] : memref<3xf32, #tpu.memory_space<smem>>
    %c2 = arith.constant 2 : index
    %2 = memref.load %arg1[%c2] : memref<3xf32, #tpu.memory_space<smem>>
    %c0_0 = arith.constant 0 : index
    %c0_1 = arith.constant 0 : index
    %c0_2 = arith.constant 0 : index
    %3 = vector.load %arg2[%c0_0, %c0_1, %c0_2] : memref<1x4x290xf32, #tpu.memory_space<vmem>>, vector<1x4x290xf32>
    %4 = vector.shape_cast %3 : vector<1x4x290xf32> to vector<4x290xf32>
    %5 = vector.broadcast %1 : f32 to vector<4x290xf32>
    %6 = arith.mulf %4, %5 : vector<4x290xf32>
    %7 = math.roundeven %6 : vector<4x290xf32>
    %8 = vector.broadcast %2 : f32 to vector<4x290xf32>
    %9 = arith.addf %7, %8 : vector<4x290xf32>
    %cst = arith.constant 0.000000e+00 : f32
    %cst_3 = arith.constant 2.550000e+02 : f32
    %10 = vector.broadcast %cst : f32 to vector<4x290xf32>
    %11 = arith.maximumf %10, %9 : vector<4x290xf32>
    %12 = vector.broadcast %cst_3 : f32 to vector<4x290xf32>
    %13 = arith.minimumf %12, %11 : vector<4x290xf32>
    %14 = vector.broadcast %2 : f32 to vector<4x290xf32>
    %15 = arith.subf %13, %14 : vector<4x290xf32>
    %16 = vector.broadcast %0 : f32 to vector<4x290xf32>
    %17 = arith.mulf %15, %16 : vector<4x290xf32>
    %18 = tpu.iota {dimensions = array<i32: 1>} : vector<4x256xi32>
    %c16_i32 = arith.constant 16 : i32
    %c0_i32 = arith.constant 0 : i32
    %19 = arith.cmpi eq, %c16_i32, %c0_i32 : i32
    %c1_i32 = arith.constant 1 : i32
    %20 = arith.select %19, %c1_i32, %c16_i32 : i32
    %21 = vector.broadcast %20 : i32 to vector<4x256xi32>
    %22 = arith.remsi %18, %21 : vector<4x256xi32>
    %c0_i32_4 = arith.constant 0 : i32
    %23 = vector.broadcast %c0_i32_4 : i32 to vector<4x256xi32>
    %24 = arith.cmpi ne, %22, %23 : vector<4x256xi32>
    %c0_i32_5 = arith.constant 0 : i32
    %25 = vector.broadcast %c0_i32_5 : i32 to vector<4x256xi32>
    %26 = arith.cmpi slt, %22, %25 : vector<4x256xi32>
    %c0_i32_6 = arith.constant 0 : i32
    %27 = arith.cmpi slt, %20, %c0_i32_6 : i32
    %28 = vector.broadcast %27 : i1 to vector<4x256xi1>
    %29 = vector.broadcast %28 : vector<4x256xi1> to vector<4x256xi1>
    %30 = arith.xori %26, %29 : vector<4x256xi1>
    %31 = arith.andi %30, %24 : vector<4x256xi1>
    %32 = vector.broadcast %20 : i32 to vector<4x256xi32>
    %33 = arith.addi %22, %32 : vector<4x256xi32>
    %34 = arith.select %31, %33, %22 : vector<4x256xi1>, vector<4x256xi32>
    %cst_7 = arith.constant 0.000000e+00 : f32
    %35 = vector.broadcast %cst_7 : f32 to vector<8x256xf32>
    %36 = vector.extract_strided_slice %17 {offsets = [0, 0], sizes = [4, 256], strides = [1, 1]} : vector<4x290xf32> to vector<4x256xf32>
    %c-1_i32 = arith.constant -1 : i32
    %37 = vector.broadcast %c-1_i32 : i32 to vector<4x256xi32>
    %38 = arith.addi %34, %37 : vector<4x256xi32>
    %c0_i32_8 = arith.constant 0 : i32
    %39 = vector.broadcast %c0_i32_8 : i32 to vector<4x256xi32>
    %40 = arith.cmpi sge, %38, %39 : vector<4x256xi32>
    %c-1_i32_9 = arith.constant -1 : i32
    %41 = vector.broadcast %c-1_i32_9 : i32 to vector<4x256xi32>
    %42 = arith.addi %34, %41 : vector<4x256xi32>
    %c16_i32_10 = arith.constant 16 : i32
    %43 = vector.broadcast %c16_i32_10 : i32 to vector<4x256xi32>
    %44 = arith.cmpi slt, %42, %43 : vector<4x256xi32>
    %45 = arith.andi %40, %44 : vector<4x256xi1>
    %cst_11 = arith.constant 0.000000e+00 : f32
    %46 = vector.broadcast %cst_11 : f32 to vector<4x256xf32>
    %47 = arith.select %45, %36, %46 : vector<4x256xi1>, vector<4x256xf32>
    %c0_12 = arith.constant 0 : index
    %c0_13 = arith.constant 0 : index
    %c0_14 = arith.constant 0 : index
    %48 = vector.load %arg3[%c0_12, %c0_13, %c0_14] : memref<9x8x4xf32, #tpu.memory_space<vmem>>, vector<1x8x4xf32>
    %49 = vector.shape_cast %48 : vector<1x8x4xf32> to vector<8x4xf32>
    %cst_15 = arith.constant dense<0.000000e+00> : vector<8x256xf32>
    %50 = tpu.matmul %49, %47, %cst_15 {dimension_numbers = #tpu.dot_dimension_numbers<[1], [0], [0], [1], [0, 0, 1, 1], [], []>} : vector<8x4xf32>, vector<4x256xf32>, vector<8x256xf32> -> vector<8x256xf32>
    %51 = arith.addf %35, %50 : vector<8x256xf32>
    %52 = vector.extract_strided_slice %17 {offsets = [0, 1], sizes = [4, 256], strides = [1, 1]} : vector<4x290xf32> to vector<4x256xf32>
    %c1_16 = arith.constant 1 : index
    %c0_17 = arith.constant 0 : index
    %c0_18 = arith.constant 0 : index
    %53 = vector.load %arg3[%c1_16, %c0_17, %c0_18] : memref<9x8x4xf32, #tpu.memory_space<vmem>>, vector<1x8x4xf32>
    %54 = vector.shape_cast %53 : vector<1x8x4xf32> to vector<8x4xf32>
    %cst_19 = arith.constant dense<0.000000e+00> : vector<8x256xf32>
    %55 = tpu.matmul %54, %52, %cst_19 {dimension_numbers = #tpu.dot_dimension_numbers<[1], [0], [0], [1], [0, 0, 1, 1], [], []>} : vector<8x4xf32>, vector<4x256xf32>, vector<8x256xf32> -> vector<8x256xf32>
    %56 = arith.addf %51, %55 : vector<8x256xf32>
    %57 = vector.extract_strided_slice %17 {offsets = [0, 2], sizes = [4, 256], strides = [1, 1]} : vector<4x290xf32> to vector<4x256xf32>
    %c1_i32_20 = arith.constant 1 : i32
    %58 = vector.broadcast %c1_i32_20 : i32 to vector<4x256xi32>
    %59 = arith.addi %34, %58 : vector<4x256xi32>
    %c0_i32_21 = arith.constant 0 : i32
    %60 = vector.broadcast %c0_i32_21 : i32 to vector<4x256xi32>
    %61 = arith.cmpi sge, %59, %60 : vector<4x256xi32>
    %c1_i32_22 = arith.constant 1 : i32
    %62 = vector.broadcast %c1_i32_22 : i32 to vector<4x256xi32>
    %63 = arith.addi %34, %62 : vector<4x256xi32>
    %c16_i32_23 = arith.constant 16 : i32
    %64 = vector.broadcast %c16_i32_23 : i32 to vector<4x256xi32>
    %65 = arith.cmpi slt, %63, %64 : vector<4x256xi32>
    %66 = arith.andi %61, %65 : vector<4x256xi1>
    %cst_24 = arith.constant 0.000000e+00 : f32
    %67 = vector.broadcast %cst_24 : f32 to vector<4x256xf32>
    %68 = arith.select %66, %57, %67 : vector<4x256xi1>, vector<4x256xf32>
    %c2_25 = arith.constant 2 : index
    %c0_26 = arith.constant 0 : index
    %c0_27 = arith.constant 0 : index
    %69 = vector.load %arg3[%c2_25, %c0_26, %c0_27] : memref<9x8x4xf32, #tpu.memory_space<vmem>>, vector<1x8x4xf32>
    %70 = vector.shape_cast %69 : vector<1x8x4xf32> to vector<8x4xf32>
    %cst_28 = arith.constant dense<0.000000e+00> : vector<8x256xf32>
    %71 = tpu.matmul %70, %68, %cst_28 {dimension_numbers = #tpu.dot_dimension_numbers<[1], [0], [0], [1], [0, 0, 1, 1], [], []>} : vector<8x4xf32>, vector<4x256xf32>, vector<8x256xf32> -> vector<8x256xf32>
    %72 = arith.addf %56, %71 : vector<8x256xf32>
    %73 = vector.extract_strided_slice %17 {offsets = [0, 16], sizes = [4, 256], strides = [1, 1]} : vector<4x290xf32> to vector<4x256xf32>
    %c-1_i32_29 = arith.constant -1 : i32
    %74 = vector.broadcast %c-1_i32_29 : i32 to vector<4x256xi32>
    %75 = arith.addi %34, %74 : vector<4x256xi32>
    %c0_i32_30 = arith.constant 0 : i32
    %76 = vector.broadcast %c0_i32_30 : i32 to vector<4x256xi32>
    %77 = arith.cmpi sge, %75, %76 : vector<4x256xi32>
    %c-1_i32_31 = arith.constant -1 : i32
    %78 = vector.broadcast %c-1_i32_31 : i32 to vector<4x256xi32>
    %79 = arith.addi %34, %78 : vector<4x256xi32>
    %c16_i32_32 = arith.constant 16 : i32
    %80 = vector.broadcast %c16_i32_32 : i32 to vector<4x256xi32>
    %81 = arith.cmpi slt, %79, %80 : vector<4x256xi32>
    %82 = arith.andi %77, %81 : vector<4x256xi1>
    %cst_33 = arith.constant 0.000000e+00 : f32
    %83 = vector.broadcast %cst_33 : f32 to vector<4x256xf32>
    %84 = arith.select %82, %73, %83 : vector<4x256xi1>, vector<4x256xf32>
    %c3 = arith.constant 3 : index
    %c0_34 = arith.constant 0 : index
    %c0_35 = arith.constant 0 : index
    %85 = vector.load %arg3[%c3, %c0_34, %c0_35] : memref<9x8x4xf32, #tpu.memory_space<vmem>>, vector<1x8x4xf32>
    %86 = vector.shape_cast %85 : vector<1x8x4xf32> to vector<8x4xf32>
    %cst_36 = arith.constant dense<0.000000e+00> : vector<8x256xf32>
    %87 = tpu.matmul %86, %84, %cst_36 {dimension_numbers = #tpu.dot_dimension_numbers<[1], [0], [0], [1], [0, 0, 1, 1], [], []>} : vector<8x4xf32>, vector<4x256xf32>, vector<8x256xf32> -> vector<8x256xf32>
    %88 = arith.addf %72, %87 : vector<8x256xf32>
    %89 = vector.extract_strided_slice %17 {offsets = [0, 17], sizes = [4, 256], strides = [1, 1]} : vector<4x290xf32> to vector<4x256xf32>
    %c4 = arith.constant 4 : index
    %c0_37 = arith.constant 0 : index
    %c0_38 = arith.constant 0 : index
    %90 = vector.load %arg3[%c4, %c0_37, %c0_38] : memref<9x8x4xf32, #tpu.memory_space<vmem>>, vector<1x8x4xf32>
    %91 = vector.shape_cast %90 : vector<1x8x4xf32> to vector<8x4xf32>
    %cst_39 = arith.constant dense<0.000000e+00> : vector<8x256xf32>
    %92 = tpu.matmul %91, %89, %cst_39 {dimension_numbers = #tpu.dot_dimension_numbers<[1], [0], [0], [1], [0, 0, 1, 1], [], []>} : vector<8x4xf32>, vector<4x256xf32>, vector<8x256xf32> -> vector<8x256xf32>
    %93 = arith.addf %88, %92 : vector<8x256xf32>
    %94 = vector.extract_strided_slice %17 {offsets = [0, 18], sizes = [4, 256], strides = [1, 1]} : vector<4x290xf32> to vector<4x256xf32>
    %c1_i32_40 = arith.constant 1 : i32
    %95 = vector.broadcast %c1_i32_40 : i32 to vector<4x256xi32>
    %96 = arith.addi %34, %95 : vector<4x256xi32>
    %c0_i32_41 = arith.constant 0 : i32
    %97 = vector.broadcast %c0_i32_41 : i32 to vector<4x256xi32>
    %98 = arith.cmpi sge, %96, %97 : vector<4x256xi32>
    %c1_i32_42 = arith.constant 1 : i32
    %99 = vector.broadcast %c1_i32_42 : i32 to vector<4x256xi32>
    %100 = arith.addi %34, %99 : vector<4x256xi32>
    %c16_i32_43 = arith.constant 16 : i32
    %101 = vector.broadcast %c16_i32_43 : i32 to vector<4x256xi32>
    %102 = arith.cmpi slt, %100, %101 : vector<4x256xi32>
    %103 = arith.andi %98, %102 : vector<4x256xi1>
    %cst_44 = arith.constant 0.000000e+00 : f32
    %104 = vector.broadcast %cst_44 : f32 to vector<4x256xf32>
    %105 = arith.select %103, %94, %104 : vector<4x256xi1>, vector<4x256xf32>
    %c5 = arith.constant 5 : index
    %c0_45 = arith.constant 0 : index
    %c0_46 = arith.constant 0 : index
    %106 = vector.load %arg3[%c5, %c0_45, %c0_46] : memref<9x8x4xf32, #tpu.memory_space<vmem>>, vector<1x8x4xf32>
    %107 = vector.shape_cast %106 : vector<1x8x4xf32> to vector<8x4xf32>
    %cst_47 = arith.constant dense<0.000000e+00> : vector<8x256xf32>
    %108 = tpu.matmul %107, %105, %cst_47 {dimension_numbers = #tpu.dot_dimension_numbers<[1], [0], [0], [1], [0, 0, 1, 1], [], []>} : vector<8x4xf32>, vector<4x256xf32>, vector<8x256xf32> -> vector<8x256xf32>
    %109 = arith.addf %93, %108 : vector<8x256xf32>
    %110 = vector.extract_strided_slice %17 {offsets = [0, 32], sizes = [4, 256], strides = [1, 1]} : vector<4x290xf32> to vector<4x256xf32>
    %c-1_i32_48 = arith.constant -1 : i32
    %111 = vector.broadcast %c-1_i32_48 : i32 to vector<4x256xi32>
    %112 = arith.addi %34, %111 : vector<4x256xi32>
    %c0_i32_49 = arith.constant 0 : i32
    %113 = vector.broadcast %c0_i32_49 : i32 to vector<4x256xi32>
    %114 = arith.cmpi sge, %112, %113 : vector<4x256xi32>
    %c-1_i32_50 = arith.constant -1 : i32
    %115 = vector.broadcast %c-1_i32_50 : i32 to vector<4x256xi32>
    %116 = arith.addi %34, %115 : vector<4x256xi32>
    %c16_i32_51 = arith.constant 16 : i32
    %117 = vector.broadcast %c16_i32_51 : i32 to vector<4x256xi32>
    %118 = arith.cmpi slt, %116, %117 : vector<4x256xi32>
    %119 = arith.andi %114, %118 : vector<4x256xi1>
    %cst_52 = arith.constant 0.000000e+00 : f32
    %120 = vector.broadcast %cst_52 : f32 to vector<4x256xf32>
    %121 = arith.select %119, %110, %120 : vector<4x256xi1>, vector<4x256xf32>
    %c6 = arith.constant 6 : index
    %c0_53 = arith.constant 0 : index
    %c0_54 = arith.constant 0 : index
    %122 = vector.load %arg3[%c6, %c0_53, %c0_54] : memref<9x8x4xf32, #tpu.memory_space<vmem>>, vector<1x8x4xf32>
    %123 = vector.shape_cast %122 : vector<1x8x4xf32> to vector<8x4xf32>
    %cst_55 = arith.constant dense<0.000000e+00> : vector<8x256xf32>
    %124 = tpu.matmul %123, %121, %cst_55 {dimension_numbers = #tpu.dot_dimension_numbers<[1], [0], [0], [1], [0, 0, 1, 1], [], []>} : vector<8x4xf32>, vector<4x256xf32>, vector<8x256xf32> -> vector<8x256xf32>
    %125 = arith.addf %109, %124 : vector<8x256xf32>
    %126 = vector.extract_strided_slice %17 {offsets = [0, 33], sizes = [4, 256], strides = [1, 1]} : vector<4x290xf32> to vector<4x256xf32>
    %c7 = arith.constant 7 : index
    %c0_56 = arith.constant 0 : index
    %c0_57 = arith.constant 0 : index
    %127 = vector.load %arg3[%c7, %c0_56, %c0_57] : memref<9x8x4xf32, #tpu.memory_space<vmem>>, vector<1x8x4xf32>
    %128 = vector.shape_cast %127 : vector<1x8x4xf32> to vector<8x4xf32>
    %cst_58 = arith.constant dense<0.000000e+00> : vector<8x256xf32>
    %129 = tpu.matmul %128, %126, %cst_58 {dimension_numbers = #tpu.dot_dimension_numbers<[1], [0], [0], [1], [0, 0, 1, 1], [], []>} : vector<8x4xf32>, vector<4x256xf32>, vector<8x256xf32> -> vector<8x256xf32>
    %130 = arith.addf %125, %129 : vector<8x256xf32>
    %131 = vector.extract_strided_slice %17 {offsets = [0, 34], sizes = [4, 256], strides = [1, 1]} : vector<4x290xf32> to vector<4x256xf32>
    %c1_i32_59 = arith.constant 1 : i32
    %132 = vector.broadcast %c1_i32_59 : i32 to vector<4x256xi32>
    %133 = arith.addi %34, %132 : vector<4x256xi32>
    %c0_i32_60 = arith.constant 0 : i32
    %134 = vector.broadcast %c0_i32_60 : i32 to vector<4x256xi32>
    %135 = arith.cmpi sge, %133, %134 : vector<4x256xi32>
    %c1_i32_61 = arith.constant 1 : i32
    %136 = vector.broadcast %c1_i32_61 : i32 to vector<4x256xi32>
    %137 = arith.addi %34, %136 : vector<4x256xi32>
    %c16_i32_62 = arith.constant 16 : i32
    %138 = vector.broadcast %c16_i32_62 : i32 to vector<4x256xi32>
    %139 = arith.cmpi slt, %137, %138 : vector<4x256xi32>
    %140 = arith.andi %135, %139 : vector<4x256xi1>
    %cst_63 = arith.constant 0.000000e+00 : f32
    %141 = vector.broadcast %cst_63 : f32 to vector<4x256xf32>
    %142 = arith.select %140, %131, %141 : vector<4x256xi1>, vector<4x256xf32>
    %c8 = arith.constant 8 : index
    %c0_64 = arith.constant 0 : index
    %c0_65 = arith.constant 0 : index
    %143 = vector.load %arg3[%c8, %c0_64, %c0_65] : memref<9x8x4xf32, #tpu.memory_space<vmem>>, vector<1x8x4xf32>
    %144 = vector.shape_cast %143 : vector<1x8x4xf32> to vector<8x4xf32>
    %cst_66 = arith.constant dense<0.000000e+00> : vector<8x256xf32>
    %145 = tpu.matmul %144, %142, %cst_66 {dimension_numbers = #tpu.dot_dimension_numbers<[1], [0], [0], [1], [0, 0, 1, 1], [], []>} : vector<8x4xf32>, vector<4x256xf32>, vector<8x256xf32> -> vector<8x256xf32>
    %146 = arith.addf %130, %145 : vector<8x256xf32>
    %c0_67 = arith.constant 0 : index
    %c0_68 = arith.constant 0 : index
    %147 = vector.load %arg4[%c0_67, %c0_68] : memref<8x1xf32, #tpu.memory_space<vmem>>, vector<8x1xf32>
    %148 = vector.broadcast %147 : vector<8x1xf32> to vector<8x256xf32>
    %149 = arith.addf %146, %148 : vector<8x256xf32>
    %cst_69 = arith.constant 0.000000e+00 : f32
    %150 = vector.broadcast %cst_69 : f32 to vector<8x256xf32>
    %151 = arith.maximumf %149, %150 : vector<8x256xf32>
    %c0_70 = arith.constant 0 : index
    %c0_71 = arith.constant 0 : index
    %c0_72 = arith.constant 0 : index
    %152 = vector.load %arg5[%c0_70, %c0_71, %c0_72] : memref<1x8x256xf32, #tpu.memory_space<vmem>>, vector<1x8x256xf32>
    %153 = vector.shape_cast %152 : vector<1x8x256xf32> to vector<8x256xf32>
    %154 = vector.shape_cast %151 : vector<8x256xf32> to vector<1x8x256xf32>
    tpu.vector_store %arg5[%c0_70, %c0_71, %c0_72], %154 {strides = array<i32>} : memref<1x8x256xf32, #tpu.memory_space<vmem>>, vector<1x8x256xf32>,
    return
  }
  func.func @transform_0(%arg0: i32) -> i32 {
    %c0_i32 = arith.constant 0 : i32
    %c0_i32_0 = arith.constant 0 : i32
    return %c0_i32 : i32
  }
  func.func @transform_1(%arg0: i32) -> (i32, i32, i32) {
    %c0_i32 = arith.constant 0 : i32
    %c0_i32_0 = arith.constant 0 : i32
    %c0_i32_1 = arith.constant 0 : i32
    return %arg0, %c0_i32, %c0_i32_0 : i32, i32, i32
  }
  func.func @transform_2(%arg0: i32) -> (i32, i32, i32) {
    %c0_i32 = arith.constant 0 : i32
    %c0_i32_0 = arith.constant 0 : i32
    %c0_i32_1 = arith.constant 0 : i32
    %c0_i32_2 = arith.constant 0 : i32
    return %c0_i32, %c0_i32_0, %c0_i32_1 : i32, i32, i32
  }
  func.func @transform_3(%arg0: i32) -> (i32, i32) {
    %c0_i32 = arith.constant 0 : i32
    %c0_i32_0 = arith.constant 0 : i32
    %c0_i32_1 = arith.constant 0 : i32
    return %c0_i32, %c0_i32_0 : i32, i32
  }
  func.func @transform_4(%arg0: i32) -> (i32, i32, i32) {
    %c0_i32 = arith.constant 0 : i32
    %c0_i32_0 = arith.constant 0 : i32
    %c0_i32_1 = arith.constant 0 : i32
    return %arg0, %c0_i32, %c0_i32_0 : i32, i32, i32
  }
}

</mosaic_0001>

<bundles_post_ra>
// kernel: model_wrapper_forward.1
= control target key start
LH: loop header
LB: loop body
LE: loop exit
PB: predicated region body
PF: predicated region fallthrough
CT: control target
= control target key end

     0   :  { %9 = vsyncpa [#allocation3], 0  ;;  %s1361_s15 = smov 0   ;;  %s1510_s0 = inlined_call_operand.vmem [shape: f32[3], index: 0, kind: input, shape index: {}]   ;;  %s1511_s1 = inlined_call_operand.vmem [shape: f32[2,4,290], index: 1, kind: input, shape index: {}]   ;;  %s1512_s2 = inlined_call_operand.vmem [shape: f32[9,8,4], index: 2, kind: input, shape index: {}]   ;;  %s1513_s3 = inlined_call_operand.vmem [shape: f32[8,1], index: 3, kind: input, shape index: {}]   ;;  %s1514_s4 = inlined_call_operand.vmem [shape: f32[2,8,256], index: 4, kind: output, shape index: {}]  }
   0x1 LB: > { %s1201_s16 = sadd.s32 4294967295, %s1323_s15   ;;  %p1203_p0 = scmp.ge.s32.totalorder %s1323_s15, 1  ;;  %s1323_s15 = sphi %s1361_s15, %s15_s15  }
   0x2   : > { %p135_p1 = scmp.lt.s32.totalorder %s1323_s15, 3  ;;  %s148_s19 = sshll.u32 %s1510_s0, 4  ;;  %s149_s19 = int_to_ptr.vmem [resolvable:$true] %s148_s19 }
   0x3   : > { %p1276_p3 = scmp.eq.s32.totalorder %s1201_s16, 0  ;;  %s1298_s21 = scalar_lea.vmem %s149_s19, 16 }
   0x4   : > { %p1372_p2 = pnand %p1203_p0, %p135_p1  ;;  %p1299_p6 = scmp.ne.s32.totalorder %s149_s19, %s1298_s21 }
   0x5   : > { %p1306_p10 = scmp.lt.s32.totalorder %s149_s19, %s149_s19  ;;  %p1307_p11 = scmp.lt.s32.totalorder %s1298_s21, %s1298_s21 }
   0x6   : > { %p1272_p4 = pneg %p1372_p2 }
   0x7   : > { %p1308_p12 = por %p1307_p11, %p1306_p10 }
   0x8   : > { %p1273_p5 = pnand %p1276_p3, %p1272_p4 }
   0xa   : > { %p1300_p7 = pneg %p1273_p5 }
   0xc   : > { %p1301_p8 = pnand %p1300_p7, %p1299_p6 }
   0xe   : > { %p1302_p9 = pneg %p1301_p8 }
  0x10   : > { %p1309_p13 = pnand %p1308_p12, %p1302_p9 }
  0x12   : > { %1312 = shalt.err (!%p1309_p13)
}
  0x13   : > { %s1325_s22 = smov [#allocation2]   ;;  %175 = sbr.rel (%p1372_p2) target bundleno = 420 (0x1a4), region = 36 }
  0x14   : > { %1275 = dma.vmem_to_smem (!%p1273_p5), %s149_s19, 16, %s1325_s22, [#allocation3]  }
  0x18   : > { %1318 = dma.done.wait (%p1276_p3), [#allocation3], 16  }
  0x19   : > { %1320 = vsyncadd (%p1276_p3), [#allocation3], 4294967280 }
  0x1a   : > { %181 = sfence }
  0x1b   : > { %p202_p0 = scmp.lt.s32.totalorder %s1201_s16, 1  ;;  %s1211_s23 = sld [smem:[#allocation2 + $0x1]]  ;;  %v234_v30 = vlaneseq  ;;  %v1329_v39 = vmov 0.0   ;;  %vm291_vm3 = vcmask 1043456   ;;  %vm287_vm5 = vcmask 31744   ;;  %v274_v42 = vld [vmem:[%s1512_s2] sm:$0xff] }
  0x1c   : > { %s1212_s28 = sld [smem:[#allocation2 + $0x2]]  ;;  %s1326_s30 = smov 127   ;;  %360 = vmatprep.mubr.f32.mxu0 %v1329_v39  ;;  %440 = vmatprep.mubr.f32.mxu1 %v1329_v39  ;;  %v1334_v43 = vmov 0   ;;  %v1122_v44 = vld [vmem:[%s1513_s3] sm:$0xff]  ;;  %vm284_vm6 = vcmask 1039360   ;;  %vm461_vm7 = vcmask 1031168  }
  0x1d   : > { %s1517_s16 = smov (!%p202_p0, %s1201_s16), 1  ;;  %s212_s29 = sld [smem:[#allocation2]]  ;;  %v1390_v32 = vand.u32 127, %v234_v30  ;;  %1297 = vset.pattern.permute.xlu0 %v1334_v43  ;;  %v1213_v61 = vld [vmem:[%s1512_s2 + $0x8] sm:$0xff]  ;;  %vm558_vm10 = vcmask 916480   ;;  %vm657_vm11 = vcmask 908288  }
  0x1e   : > { %s1251_s24 = smul.u32 12, %s1517_s16  ;;  %s1327_s5 = smov 126   ;;  %vm746_vm12 = vcmask 900096   ;;  %vm843_vm13 = vcmask 785408   ;;  %vm942_vm14 = vcmask 777216   ;;  %vm1031_vm15 = vcmask 769024  }
  0x1f   : > { %v236_v33 = vadd.s32 128, %v1390_v32  ;;  %v241_v35 = vand.u32 15, %v1390_v32  ;;  %s1328_s6 = smov 112   ;;  %s1330_s7 = smov 111  }
  0x20   : > { %s206_s27 = scalar_lea.vmem %s1511_s1, %s1251_s24  ;;  %s1331_s10 = smov 110  }
  0x21   : > { %v216_v0 = vld [vmem:[%s206_s27 + $0x8] sm:$0xf]  ;;  %v217_v1 = vstv %s1211_s23  ;;  %v215_v2 = vld [vmem:[%s206_s27] sm:$0xff]  ;;  %v248_v34 = vand.u32 15, %v236_v33  ;;  %v1399_v38 = vadd.s32 4294967295, %v241_v35  ;;  %s1332_s11 = smov 96  }
  0x22   : > { %v219_v3 = vmul.f32 %v217_v1, %v216_v0  ;;  %v218_v4 = vmul.f32 %v217_v1, %v215_v2  ;;  %v222_v16 = vstv %s1212_s28  ;;  %s1333_s12 = smov 95   ;;  %s1335_s13 = smov 94   ;;  %v1423_v56 = vadd.s32 1, %v241_v35 }
  0x23   : > { %v231_v25 = vstv %s212_s29  ;;  %v1397_v36 = vadd.s32 4294967295, %v248_v34  ;;  %vm263_vm4 = vcmp.ge.s32.totalorder %v1399_v38, 0  ;;  %v1421_v54 = vadd.s32 1, %v248_v34  ;;  %s1250_s8 = sshll.u32 %s1517_s16, 4 }
  0x24   : > { %v1262_v5 = vcvt.f32.s32 %v219_v3  ;;  %v1260_v6 = vand.u32 2147483647, %v219_v3  ;;  %v1254_v7 = vcvt.f32.s32 %v218_v4  ;;  %v1265_v9 = vand.u32 2147483648, %v219_v3 }
  0x25   : > { %v1252_v10 = vand.u32 2147483647, %v218_v4  ;;  %v1257_v12 = vand.u32 2147483648, %v218_v4  ;;  %vm264_vm2 = vcmp.ge.s32.totalorder %v1397_v36, 0  ;;  %vm452_vm8 = vcmp.lt.s32.totalorder %v1421_v54, 16 }
  0x26   : > { %v1263_v8 = vcvt.s32.f32 %v1262_v5  ;;  %v1255_v11 = vcvt.s32.f32 %v1254_v7  ;;  %vm1261_vm0 = vcmp.lt.f32.partialorder %v1260_v6, 8388608.0  ;;  %vm451_vm9 = vcmp.lt.s32.totalorder %v1423_v56, 16  ;;  %v1220_v6 = vld [vmem:[%s1512_s2 + $0x10] sm:$0xff] }
  0x27   : > { %vm1253_vm1 = vcmp.lt.f32.partialorder %v1252_v10, 8388608.0  ;;  %v1224_v10 = vld [vmem:[%s1512_s2 + $0x18] sm:$0xff] }
  0x28   : > { %v1264_v13 = vand.u32 2147483647, %v1263_v8  ;;  %v1256_v14 = vand.u32 2147483647, %v1255_v11 }
  0x2a   : > { %v1266_v15 = vor.u32 %v1265_v9, %v1264_v13  ;;  %v1258_v17 = vor.u32 %v1257_v12, %v1256_v14 }
  0x2c   : > { %v1267_v18 = vsel %vm1261_vm0, %v1266_v15, %v219_v3  ;;  %v1259_v20 = vsel %vm1253_vm1, %v1258_v17, %v218_v4 }
  0x2d   : > { %v224_v19 = vadd.f32 %v1267_v18, %v222_v16  ;;  %v223_v21 = vadd.f32 %v1259_v20, %v222_v16 }
  0x2f   : > { %v226_v22 = vmax.f32 %v224_v19, 0.0  ;;  %v225_v23 = vmax.f32 %v223_v21, 0.0  ;;  %v1232_v19 = vld [vmem:[%s1512_s2 + $0x28] sm:$0xff] }
  0x31   : > { %v228_v24 = vmin.f32 %v226_v22, 255.0  ;;  %v227_v26 = vmin.f32 %v225_v23, 255.0 }
  0x33   : > { %v230_v27 = vsub.f32 %v228_v24, %v222_v16  ;;  %v229_v28 = vsub.f32 %v227_v26, %v222_v16  ;;  %v1228_v16 = vld [vmem:[%s1512_s2 + $0x20] sm:$0xff] }
  0x35   : > { %v233_v29 = vmul.f32 %v231_v25, %v230_v27  ;;  %v232_v31 = vmul.f32 %v231_v25, %v229_v28  ;;  %v1236_v25 = vld [vmem:[%s1512_s2 + $0x30] sm:$0xff] }
  0x37   : > { %282 = vrot.lane.b32.xlu0 %v233_v29, %s1326_s30  ;;  %278 = vrot.lane.b32.xlu1 %v232_v31, %s1326_s30  ;;  %v270_v37 = vcombine.high %v232_v31, %v232_v31  ;;  %v272_v41 = vsel %vm263_vm4, %v232_v31, 0.0 }
  0x39   : > { %v273_v40 = vsel %vm264_vm2, %v270_v37, 0.0 }
  0x3a   : > { %1217 = vmatprep.subr.msk.mxu1 %vm291_vm3, %v273_v40 }
  0x3b   : > { %459 = vrot.lane.b32.xlu0 %v233_v29, %s1327_s5  ;;  %455 = vrot.lane.b32.xlu1 %v232_v31, %s1327_s5 }
  0x3c   : > { %1218 = vmatpush1.msk.msra.mxu1 %vm291_vm3, %v272_v41 }
  0x3d   : > { %1219 = vmatmul.mubr.msk.f32.vlgmr.msra.gmra.mxu1 %vm287_vm5, %v274_v42 }
  0x3e   : > { %640 = vmatprep.mubr.f32.mxu1 %v1329_v39 }
  0x3f   : > { %552 = vrot.lane.b32.xlu0 %v232_v31, %s1328_s6  ;;  %556 = vrot.lane.b32.xlu1 %v233_v29, %s1328_s6 }
  0x43   : > { %655 = vrot.lane.b32.xlu0 %v233_v29, %s1330_s7  ;;  %651 = vrot.lane.b32.xlu1 %v232_v31, %s1330_s7 }
  0x47   : > { %740 = vrot.lane.b32.xlu0 %v232_v31, %s1331_s10  ;;  %744 = vrot.lane.b32.xlu1 %v233_v29, %s1331_s10 }
  0x4b   : > { %280 = vrot.lane.b32.xlu0 %v270_v37, %s1326_s30  ;;  %457 = vrot.lane.b32.xlu1 %v270_v37, %s1327_s5 }
  0x4f   : > { %554 = vrot.lane.b32.xlu0 %v270_v37, %s1328_s6  ;;  %653 = vrot.lane.b32.xlu1 %v270_v37, %s1330_s7 }
  0x53   : > { %742 = vrot.lane.b32.xlu0 %v270_v37, %s1331_s10  ;;  %839 = vrot.lane.b32.xlu1 %v270_v37, %s1332_s11 }
  0x57   : > { %841 = vrot.lane.b32.xlu0 %v233_v29, %s1332_s11  ;;  %837 = vrot.lane.b32.xlu1 %v232_v31, %s1332_s11  ;;  %s211_s11 = scalar_lea.vmem %s1514_s4, %s1250_s8 }
  0x5b   : > { %938 = vrot.lane.b32.xlu0 %v270_v37, %s1333_s12  ;;  %940 = vrot.lane.b32.xlu1 %v233_v29, %s1333_s12 }
  0x5f   : > { %936 = vrot.lane.b32.xlu0 %v232_v31, %s1333_s12  ;;  %1027 = vrot.lane.b32.xlu1 %v270_v37, %s1335_s13 }
  0x63   : > { %1029 = vrot.lane.b32.xlu0 %v233_v29, %s1335_s13  ;;  %1025 = vrot.lane.b32.xlu1 %v232_v31, %s1335_s13  ;;  %v1240_v31 = vld [vmem:[%s1512_s2 + $0x38] sm:$0xff] }
  0x67   : > { %1125 = vperm.xlu0 %1297, %v1122_v44  }
  0xa9   : > { %v283_v45 = vpop.permute.xlu0 %282  ;;  %v279_v46 = vpop.permute.xlu1 %278 }
  0xad   : > { %v460_v47 = vpop.permute.xlu0 %459  ;;  %v456_v48 = vpop.permute.xlu1 %455 }
  0xb1   : > { %v553_v49 = vpop.permute.xlu0 %552  ;;  %v557_v50 = vpop.permute.xlu1 %556 }
  0xb5   : > { %v656_v51 = vpop.permute.xlu0 %655  ;;  %v652_v52 = vpop.permute.xlu1 %651 }
  0xb9   : > { %v741_v53 = vpop.permute.xlu0 %740  ;;  %v745_v55 = vpop.permute.xlu1 %744 }
  0xbd   : > { %v281_v57 = vpop.permute.xlu0 %280  ;;  %v458_v58 = vpop.permute.xlu1 %457 }
  0xbe   : > { %v286_v59 = vsel %vm284_vm6, %v281_v57, %v283_v45  ;;  %v285_v60 = vsel %vm284_vm6, %v279_v46, %v281_v57  ;;  %v462_v62 = vsel %vm461_vm7, %v456_v48, %v458_v58  ;;  %v463_v63 = vsel %vm461_vm7, %v458_v58, %v460_v47 }
  0xbf   : > { %1214 = vmatprep.subr.msk.mxu0 %vm291_vm3, %v286_v59  ;;  %v467_v0 = vsel %vm452_vm8, %v463_v63, 0.0  ;;  %v466_v1 = vsel %vm451_vm9, %v462_v62, 0.0 }
  0xc0   : > { %1215 = vmatpush1.msk.msra.mxu0 %vm291_vm3, %v285_v60 }
  0xc1   : > { %1216 = vmatmul.mubr.msk.f32.vlgmr.msra.gmra.mxu0 %vm287_vm5, %v1213_v61  ;;  %1221 = vmatprep.subr.msk.mxu0 %vm291_vm3, %v467_v0  ;;  %v555_v2 = vpop.permute.xlu0 %554  ;;  %v654_v3 = vpop.permute.xlu1 %653 }
  0xc2   : > { %v559_v4 = vsel %vm558_vm10, %v553_v49, %v555_v2  ;;  %v560_v5 = vsel %vm558_vm10, %v555_v2, %v557_v50  ;;  %1222 = vmatpush1.msk.msra.mxu0 %vm291_vm3, %v466_v1  ;;  %543 = vmatprep.mubr.f32.mxu0 %v1329_v39  ;;  %v659_v7 = vsel %vm657_vm11, %v654_v3, %v656_v51 }
  0xc3   : > { %v563_v8 = vsel %vm263_vm4, %v559_v4, 0.0  ;;  %v564_v9 = vsel %vm264_vm2, %v560_v5, 0.0  ;;  %1229 = vmatprep.subr.msk.mxu0 %vm291_vm3, %v659_v7  ;;  %v658_v11 = vsel %vm657_vm11, %v652_v52, %v654_v3 }
  0xc4   : > { %1225 = vmatprep.subr.msk.mxu1 %vm291_vm3, %v564_v9 }
  0xc5   : > { %1223 = vmatmul.mubr.msk.f32.vlgmr.msra.gmra.mxu0 %vm287_vm5, %v1220_v6  ;;  %v743_v12 = vpop.permute.xlu0 %742  ;;  %1226 = vmatpush1.msk.msra.mxu1 %vm291_vm3, %v563_v8  ;;  %v840_v13 = vpop.permute.xlu1 %839 }
  0xc6   : > { %1230 = vmatpush1.msk.msra.mxu0 %vm291_vm3, %v658_v11  ;;  %v747_v14 = vsel %vm746_vm12, %v741_v53, %v743_v12  ;;  %v748_v15 = vsel %vm746_vm12, %v743_v12, %v745_v55  ;;  %1227 = vmatmul.mubr.msk.f32.vlgmr.msra.gmra.mxu1 %vm287_vm5, %v1224_v10 }
  0xc7   : > { %v751_v17 = vsel %vm451_vm9, %v747_v14, 0.0  ;;  %v752_v18 = vsel %vm452_vm8, %v748_v15, 0.0  ;;  %731 = vmatprep.mubr.f32.mxu0 %v1329_v39  ;;  %828 = vmatprep.mubr.f32.mxu1 %v1329_v39 }
  0xc8   : > { %1233 = vmatprep.subr.msk.mxu1 %vm291_vm3, %v752_v18 }
  0xc9   : > { %v842_v20 = vpop.permute.xlu0 %841  ;;  %1234 = vmatpush1.msk.msra.mxu1 %vm291_vm3, %v751_v17  ;;  %1231 = vmatmul.mubr.msk.f32.vlgmr.msra.gmra.mxu0 %vm287_vm5, %v1228_v16  ;;  %v838_v21 = vpop.permute.xlu1 %837 }
  0xca   : > { %v845_v22 = vsel %vm843_vm13, %v840_v13, %v842_v20  ;;  %1235 = vmatmul.mubr.msk.f32.vlgmr.msra.gmra.mxu1 %vm287_vm5, %v1232_v19  ;;  %925 = vmatprep.mubr.f32.mxu0 %v1329_v39  ;;  %v844_v23 = vsel %vm843_vm13, %v838_v21, %v840_v13 }
  0xcb   : > { %v849_v24 = vsel %vm264_vm2, %v845_v22, 0.0  ;;  %1016 = vmatprep.mubr.f32.mxu1 %v1329_v39  ;;  %v848_v26 = vsel %vm263_vm4, %v844_v23, 0.0 }
  0xcc   : > { %1237 = vmatprep.subr.msk.mxu0 %vm291_vm3, %v849_v24 }
  0xcd   : > { %1238 = vmatpush1.msk.msra.mxu0 %vm291_vm3, %v848_v26  ;;  %v939_v27 = vpop.permute.xlu0 %938  ;;  %v941_v28 = vpop.permute.xlu1 %940 }
  0xce   : > { %1239 = vmatmul.mubr.msk.f32.vlgmr.msra.gmra.mxu0 %vm287_vm5, %v1236_v25  ;;  %v944_v29 = vsel %vm942_vm14, %v939_v27, %v941_v28 }
  0xcf   : > { %1113 = vmatprep.mubr.f32.mxu0 %v1329_v39  ;;  %1241 = vmatprep.subr.msk.mxu1 %vm291_vm3, %v944_v29  ;;  %v1244_v39 = vld [vmem:[%s1512_s2 + $0x40] sm:$0xff] }
  0xd1   : > { %v937_v30 = vpop.permute.xlu0 %936  ;;  %v1028_v32 = vpop.permute.xlu1 %1027 }
  0xd2   : > { %v943_v33 = vsel %vm942_vm14, %v937_v30, %v939_v27 }
  0xd3   : > { %1242 = vmatpush1.msk.msra.mxu1 %vm291_vm3, %v943_v33 }
  0xd4   : > { %1243 = vmatmul.mubr.msk.f32.vlgmr.msra.gmra.mxu1 %vm287_vm5, %v1240_v31 }
  0xd5   : > { %v1030_v34 = vpop.permute.xlu0 %1029  ;;  %v1026_v35 = vpop.permute.xlu1 %1025 }
  0xd6   : > { %v1033_v36 = vsel %vm1031_vm15, %v1028_v32, %v1030_v34  ;;  %v1032_v37 = vsel %vm1031_vm15, %v1026_v35, %v1028_v32 }
  0xd7   : > { %v1037_v38 = vsel %vm452_vm8, %v1033_v36, 0.0  ;;  %v1036_v40 = vsel %vm451_vm9, %v1032_v37, 0.0 }
  0xd8   : > { %1245 = vmatprep.subr.msk.mxu0 %vm291_vm3, %v1037_v38 }
  0xd9   : > { %1246 = vmatpush1.msk.msra.mxu0 %vm291_vm3, %v1036_v40 }
  0xda   : > { %1247 = vmatmul.mubr.msk.f32.vlgmr.msra.gmra.mxu0 %vm287_vm5, %v1244_v39 }
  0xe2   : > { %v1126_v7 = vpop.permute.xlu0 %1125 }
  0xfd   : > { %v442_v41 = vpop.f32.mrf.mxu1 }
  0xff   : > { %v444_v43 = vpop.f32.mrf.mxu1 }
 0x181   : > { %v362_v42 = vpop.f32.mrf.mxu0 }
 0x182   : > { %v443_v44 = vadd.f32 %v442_v41, %v362_v42 }
 0x183   : > { %v364_v45 = vpop.f32.mrf.mxu0 }
 0x184   : > { %v445_v46 = vadd.f32 %v444_v43, %v364_v45 }
 0x185   : > { %v545_v47 = vpop.f32.mrf.mxu0 }
 0x186   : > { %v550_v48 = vadd.f32 %v545_v47, %v443_v44  ;;  %v642_v49 = vpop.f32.mrf.mxu1 }
 0x187   : > { %v547_v50 = vpop.f32.mrf.mxu0 }
 0x188   : > { %v551_v51 = vadd.f32 %v547_v50, %v445_v46  ;;  %v644_v52 = vpop.f32.mrf.mxu1  ;;  %v647_v53 = vadd.f32 %v642_v49, %v550_v48 }
 0x189   : > { %v733_v54 = vpop.f32.mrf.mxu0 }
 0x18a   : > { %v648_v55 = vadd.f32 %v644_v52, %v551_v51  ;;  %v830_v57 = vpop.f32.mrf.mxu1  ;;  %v738_v58 = vadd.f32 %v733_v54, %v647_v53 }
 0x18b   : > { %v735_v56 = vpop.f32.mrf.mxu0 }
 0x18c   : > { %v739_v59 = vadd.f32 %v735_v56, %v648_v55  ;;  %v832_v60 = vpop.f32.mrf.mxu1  ;;  %v835_v62 = vadd.f32 %v830_v57, %v738_v58 }
 0x18e   : > { %v927_v61 = vpop.f32.mrf.mxu0  ;;  %v836_v63 = vadd.f32 %v832_v60, %v739_v59 }
 0x18f   : > { %v932_v2 = vadd.f32 %v927_v61, %v835_v62 }
 0x190   : > { %v929_v0 = vpop.f32.mrf.mxu0 }
 0x191   : > { %v933_v3 = vadd.f32 %v929_v0, %v836_v63 }
 0x194   : > { %v1018_v1 = vpop.f32.mrf.mxu1 }
 0x195   : > { %v1023_v5 = vadd.f32 %v1018_v1, %v932_v2 }
 0x196   : > { %v1020_v4 = vpop.f32.mrf.mxu1 }
 0x197   : > { %v1024_v8 = vadd.f32 %v1020_v4, %v933_v3 }
 0x19a   : > { %v1115_v6 = vpop.f32.mrf.mxu0 }
 0x19b   : > { %v1120_v9 = vadd.f32 %v1115_v6, %v1023_v5 }
 0x19c   : > { %v1117_v10 = vpop.f32.mrf.mxu0 }
 0x19d   : > { %v1121_v11 = vadd.f32 %v1117_v10, %v1024_v8  ;;  %v1128_v12 = vadd.f32 %v1126_v7, %v1120_v9 }
 0x19f   : > { %v1129_v13 = vadd.f32 %v1126_v7, %v1121_v11  ;;  %v1130_v14 = vmax.f32 %v1128_v12, 0.0 }
 0x1a1   : > { %v1131_v15 = vmax.f32 %v1129_v13, 0.0  ;;  %1132 = vst [vmem:[%s211_s11] sm:$0xff] %v1130_v14 }
 0x1a3   : > { %1133 = vst [vmem:[%s211_s11 + $0x8] sm:$0xff] %v1131_v15 }
 0x1a4 PF: > { %s15_s15 = sadd.s32 1, %s1323_s15  }
 0x1a5   : > { %p12_p1 = scmp.ge.s32.totalorder %s15_s15, 4  }
 0x1a7   :  { %14 = sbr.rel (!%p12_p1) target bundleno = 1 (0x1), region = 79 }
 0x1ac   :  { %1155 = vsyncpa [#allocation3], 1 }
 0x1ad   :  { %1157 = vsyncpa [#allocation3 + $0x1], 1 }

</bundles_post_ra>
